<compile_context>
chip_gen: v6e
topology: v6e:2x2x1
jax: 0.10.0
libtpu: 0.0.40
codegen_flags: <defaults>
</compile_context>

<pallas_src>
import math

import jax
import jax.numpy as jnp
from jax.experimental import pallas as pl
from jax.experimental.pallas import tpu as pltpu


def _copy_kernel(x_ref, o_ref):
    # Identity copy: the entire semantic content of View's forward pass.
    o_ref[...] = x_ref[...]


def _resolve_view_size(numel, size):
    """Resolve a torch.view-style size tuple (supporting a single -1)."""
    size = tuple(int(s) for s in size)
    if -1 in size:
        known = 1
        for s in size:
            if s != -1:
                known *= s
        assert known > 0 and numel % known == 0, "view size incompatible with input"
        size = tuple(numel // known if s == -1 else s for s in size)
    assert math.prod(size) == numel, "view size incompatible with input"
    return size


_LANE_CANDIDATES = (2048, 1024, 512, 256, 128)


def _choose_layout(numel, itemsize, max_block_bytes):
    """Pick (rows, lane, block_rows) for a lane-dense tiled copy, or None."""
    lane = next((c for c in _LANE_CANDIDATES if numel % c == 0), None)
    if lane is None:
        return None                     # ragged size -> caller falls back
    rows = numel // lane
    # Sublane packing factor: 8 for 32-bit, 16 for 16-bit, 32 for 8-bit dtypes.
    pack = 8 * max(1, 4 // itemsize)
    target_rows = max(pack, max_block_bytes // (lane * itemsize))
    if rows <= target_rows:
        return rows, lane, rows         # single block == full extent (still lane-dense)
    # Largest divisor of rows that is a multiple of `pack` and <= target_rows.
    d = target_rows - (target_rows % pack)
    while d >= pack:
        if rows % d == 0:
            return rows, lane, d
        d -= pack
    return None                         # no aligned divisor -> caller falls back


def view_pallas(x, size, *, materialize=True, max_block_bytes=1 << 20):
    """Equivalent of torch.Tensor.view(size).

    materialize=False (or an untileable element count) uses the metadata-only
    jnp.reshape path — a view is free, so no kernel is launched in that case.
    """
    numel = x.size
    out_shape = _resolve_view_size(numel, size)
    itemsize = jnp.dtype(x.dtype).itemsize

    if not materialize:
        # A contiguous .view() is pure metadata; zero HBM traffic.
        return jnp.reshape(x, out_shape)

    layout = _choose_layout(numel, itemsize, max_block_bytes)
    if layout is None:
        # Ragged / untileable sizes: metadata-only reshape instead of a giant
        # unaligned (1, numel) block (no masked stores, no VMEM-overflow risk).
        # TODO(synk): torch .view() errors on non-contiguous tensors; we always
        # operate on contiguous (row-major) data, so that check has no analogue.
        return jnp.reshape(x, out_shape)

    rows, lane, block_rows = layout
    flat2d = x.reshape(rows, lane)       # row-major == contiguous .view() order
    grid = (rows // block_rows,)

    copied = pl.pallas_call(
        _copy_kernel,
        out_shape=jax.ShapeDtypeStruct((rows, lane), x.dtype),
        grid_spec=pltpu.PrefetchScalarGridSpec(
            num_scalar_prefetch=0,
            grid=grid,
            in_specs=[pl.BlockSpec((block_rows, lane), lambda i: (i, 0))],
            out_specs=pl.BlockSpec((block_rows, lane), lambda i: (i, 0)),
        ),
        compiler_params=pltpu.CompilerParams(
            # Row blocks are independent: lets v7x shard the copy across both
            # TensorCores; harmless on single-TC v5e/v6e.
            dimension_semantics=("parallel",),
        ),
        cost_estimate=pl.CostEstimate(
            flops=0,
            transcendentals=0,
            bytes_accessed=2 * numel * itemsize,
        ),
    )(flat2d)

    # Final reshape is pure metadata (glue), identical to torch's view.
    return copied.reshape(out_shape)


if __name__ == "__main__":
    key = jax.random.PRNGKey(0)

    # Primary example consistent with typical encoder usage: flatten NCHW
    # features with View(size=(2, -1)).
    x = jax.random.normal(key, (2, 4, 16, 16), dtype=jnp.float32)
    out = view_pallas(x, (2, -1))
    out = jax.block_until_ready(out)
    ref = x.reshape(2, 4 * 16 * 16)
    assert out.shape == ref.shape, (out.shape, ref.shape)
    assert out.dtype == ref.dtype
    assert bool(jnp.all(out == ref))

    # Second (still small) case that exercises the multi-block pipelined grid:
    # 512 KiB input, 128 KiB blocks -> grid of 4 lane-dense (16, 2048) tiles.
    y = jax.random.normal(jax.random.PRNGKey(0), (8, 16, 32, 32),
                          dtype=jnp.float32)
    out2 = view_pallas(y, (-1, 32 * 32), max_block_bytes=128 << 10)
    out2 = jax.block_until_ready(out2)
    ref2 = y.reshape(8 * 16, 32 * 32)
    assert out2.shape == ref2.shape
    assert bool(jnp.all(out2 == ref2))

    print("KERNEL_OK")
</pallas_src>

<mosaic_0001>
module attributes {stable_mosaic.version = 11 : i64} {
  func.func @_copy_kernel(%arg0: i32, %arg1: memref<1x2048xf32, #tpu.memory_space<vmem>>, %arg2: memref<1x2048xf32, #tpu.memory_space<vmem>>) attributes {dimension_semantics = [#tpu.dimension_semantics<parallel>], iteration_bounds = array<i64: 1>, scalar_prefetch = 0 : i64, scratch_operands = 0 : i64, tpu.core_type = #tpu.core_type<tc>, window_params = [{transform_indices = @transform_0, window_bounds = array<i64: 1, 2048>}, {transform_indices = @transform_1, window_bounds = array<i64: 1, 2048>}]} {
    %c0 = arith.constant 0 : index
    %c0_0 = arith.constant 0 : index
    %0 = vector.load %arg1[%c0, %c0_0] : memref<1x2048xf32, #tpu.memory_space<vmem>>, vector<1x2048xf32>
    %c0_1 = arith.constant 0 : index
    %c0_2 = arith.constant 0 : index
    %1 = vector.load %arg2[%c0_1, %c0_2] : memref<1x2048xf32, #tpu.memory_space<vmem>>, vector<1x2048xf32>
    tpu.vector_store %arg2[%c0_1, %c0_2], %0 {strides = array<i32>} : memref<1x2048xf32, #tpu.memory_space<vmem>>, vector<1x2048xf32>,
    return
  }
  func.func @transform_0(%arg0: i32) -> (i32, i32) {
    %c0_i32 = arith.constant 0 : i32
    %c0_i32_0 = arith.constant 0 : i32
    return %arg0, %c0_i32 : i32, i32
  }
  func.func @transform_1(%arg0: i32) -> (i32, i32) {
    %c0_i32 = arith.constant 0 : i32
    %c0_i32_0 = arith.constant 0 : i32
    return %arg0, %c0_i32 : i32, i32
  }
}

</mosaic_0001>

<bundles_post_ra>
// kernel: tpu_custom_call.1
= control target key start
LH: loop header
LB: loop body
LE: loop exit
PB: predicated region body
PF: predicated region fallthrough
CT: control target
= control target key end

     0   :  { %6 = vsyncpa [#allocation3], 0  ;;  %s104_s0 = inlined_call_operand.hbm [shape: f32[1,2048], index: 0, kind: input, shape index: {}]   ;;  %s105_s1 = inlined_call_operand.hbm [shape: f32[1,2048], index: 1, kind: output, shape index: {}]  }
   0x1   :  { %7 = vsyncpa [#allocation4], 0  ;;  %s86_s6 = smov [#allocation2]  }
   0x2   :  { %s14_s7 = sshll.u32 %s86_s6, 4  ;;  %s15_s7 = int_to_ptr.vmem [resolvable:$true] %s14_s7 }
   0x3   :  { %s50_s8 = scalar_lea.vmem %s15_s7, 256  ;;  %p55_p1 = scmp.lt.s32.totalorder %s15_s7, %s15_s7 }
   0x4   :  { %p51_p0 = scmp.ne.s32.totalorder %s15_s7, %s50_s8  ;;  %p56_p2 = scmp.lt.s32.totalorder %s50_s8, %s50_s8 }
   0x6   :  { %p57_p3 = por %p56_p2, %p55_p1 }
   0x8   :  { %p58_p4 = pnand %p57_p3, %p51_p0 }
   0xa   :  { %61 = shalt.err (!%p58_p4)
}
   0xb   :  { %17 = dma.hbm_to_vmem [thread:$0]  %s104_s0, 256, %s15_s7, [#allocation3]  }
   0xc   :  { %82 = dma.done.wait [#allocation3], 256  }
   0xd   :  { %83 = vsyncadd [#allocation3], 4294967040  ;;  %s87_s11 = smov [#allocation5]   ;;  %v21_v0 = vld [vmem:[#allocation2] sm:$0xff]  ;;  %v22_v1 = vld [vmem:[#allocation2 + $0x8] sm:$0xff] }
   0xe   :  { %s31_s12 = sshll.u32 %s87_s11, 4  ;;  %23 = vst [vmem:[#allocation5] sm:$0xff] %v21_v0  ;;  %24 = vst [vmem:[#allocation5 + $0x8] sm:$0xff] %v22_v1  ;;  %s32_s12 = int_to_ptr.vmem [resolvable:$true] %s31_s12 }
   0xf   :  { %s62_s13 = scalar_lea.vmem %s32_s12, 256  ;;  %p67_p6 = scmp.lt.s32.totalorder %s32_s12, %s32_s12 }
  0x10   :  { %p63_p5 = scmp.ne.s32.totalorder %s32_s12, %s62_s13  ;;  %p68_p7 = scmp.lt.s32.totalorder %s62_s13, %s62_s13 }
  0x12   :  { %p69_p8 = por %p68_p7, %p67_p6 }
  0x14   :  { %p70_p9 = pnand %p69_p8, %p63_p5 }
  0x16   :  { %73 = shalt.err (!%p70_p9)
}
  0x17   :  { %34 = dma.vmem_to_hbm [thread:$0]  %s32_s12, 256, %s105_s1, [#allocation4]  }
  0x18   :  { %84 = dma.done.wait [#allocation4], 256  }
  0x19   :  { %85 = vsyncadd [#allocation4], 4294967040 }
  0x1a   :  { %38 = vsyncpa [#allocation3], 1 }
  0x1b   :  { %39 = vsyncpa [#allocation4], 1 }

</bundles_post_ra>
